<compile_context>
chip_gen: v5e
topology: v5e:2x2
jax: 0.10.0
libtpu: 0.0.40
codegen_flags: <defaults>
</compile_context>

<pallas_src>
import jax
import jax.numpy as jnp
from jax import lax
from jax.experimental import pallas as pl
from jax.experimental.pallas import tpu as pltpu

_LANE = 128
_SMOOTH = 1.0


def _device_kind() -> str:
    try:
        return jax.devices()[0].device_kind.lower()
    except Exception:  # pragma: no cover - defensive only
        return ""


def _scalar_pair_block(s0, s1):
    """(8,128) f32 tile: s0 at [0,0], s1 at [0,1], zeros elsewhere (lane-dense store)."""
    rid = lax.broadcasted_iota(jnp.int32, (8, _LANE), 0)
    cid = lax.broadcasted_iota(jnp.int32, (8, _LANE), 1)
    return jnp.where(
        (rid == 0) & (cid == 0), s0,
        jnp.where((rid == 0) & (cid == 1), s1, jnp.float32(0.0)),
    )


def _make_partial_kernel(row_tile, rem, nblocks):
    """Per-block partial sums of (p*l) and (p+l)."""

    def kernel(p_ref, l_ref, o_ref):
        p = p_ref[...].astype(jnp.float32)
        l = l_ref[...].astype(jnp.float32)

        # Hot path: branch-free, mask-free (runs on every block).
        o_ref[...] = _scalar_pair_block(jnp.sum(p * l), jnp.sum(p + l))[None]

        if rem:  # static: only emitted when the last block is partial
            @pl.when(pl.program_id(0) == nblocks - 1)
            def _():
                # Last block only: mask out-of-bounds rows (Pallas does not
                # guarantee zeros there) and overwrite the partials.
                rid = lax.broadcasted_iota(jnp.int32, (row_tile, _LANE), 0)
                keep = rid < rem
                pm = jnp.where(keep, p, jnp.float32(0.0))
                lm = jnp.where(keep, l, jnp.float32(0.0))
                o_ref[...] = _scalar_pair_block(
                    jnp.sum(pm * lm), jnp.sum(pm + lm))[None]

    return kernel


def _single_block_kernel(p_ref, l_ref, o_ref):
    """Small-input path: full reduction AND the final divide done in-kernel."""
    p = p_ref[...].astype(jnp.float32)
    l = l_ref[...].astype(jnp.float32)
    inter = jnp.sum(p * l)
    denom = jnp.sum(p + l)
    dice = (2.0 * inter + jnp.float32(_SMOOTH)) / (denom + jnp.float32(_SMOOTH))
    o_ref[...] = _scalar_pair_block(dice, jnp.float32(0.0))


def _max_row_tile(p_itemsize, l_itemsize, kind, block_bytes):
    """Rows per block (multiple of 32), sized in bytes against scoped VMEM."""
    if block_bytes is not None:
        rows = block_bytes // (_LANE * max(p_itemsize, l_itemsize))
    else:
        # Per grid step we hold: 2x double-buffered native-dtype input blocks
        # plus ~6 f32-sized value temporaries (casts, p*l, p+l, and the masked
        # last-block recompute, with buffer reuse).  Budgets leave headroom
        # under the default scoped-VMEM limits (v5e 16 MiB, v6e/v7x 32 MiB).
        budget = (24 << 20) if ("v6" in kind or "v7" in kind) else (12 << 20)
        bytes_per_row = 2 * _LANE * (p_itemsize + l_itemsize) + 6 * _LANE * 4
        rows = budget // bytes_per_row
    return max(32, (rows // 32) * 32)


def dice_coefficient(preds, labels, *, block_bytes=None):
    """Pallas equivalent of DiceCoefficient.forward(preds, labels) -> scalar f32."""
    assert preds.shape == labels.shape
    smooth = jnp.float32(_SMOOTH)

    pf = preds.reshape(-1)   # zero-copy view; dtype untouched
    lf = labels.reshape(-1)
    n = int(pf.shape[0])
    if n == 0:
        # Degenerate empty input: all sums are 0 -> dice = 1.0
        return jnp.float32(1.0)

    pad = (-n) % _LANE
    if pad:
        # Rare path (numel not a multiple of 128): pad <=127 zeros so the
        # (rows, 128) sublane/lane view exists; zeros do not change the sums.
        pf = jnp.pad(pf, (0, pad))
        lf = jnp.pad(lf, (0, pad))

    rows = (n + pad) // _LANE
    p2 = pf.reshape(rows, _LANE)
    l2 = lf.reshape(rows, _LANE)

    kind = _device_kind()
    p_isz = jnp.dtype(preds.dtype).itemsize
    l_isz = jnp.dtype(labels.dtype).itemsize
    max_rows = _max_row_tile(p_isz, l_isz, kind, block_bytes)

    # Advisory scheduler hint: this is a pure HBM-bandwidth reduction.
    cost = pl.CostEstimate(
        flops=3 * rows * _LANE,
        transcendentals=0,
        bytes_accessed=rows * _LANE * (p_isz + l_isz),
    )

    if rows <= max_rows:
        # Single block: compute the final dice entirely in-kernel (saves the
        # partials round-trip and the wrapper reduce/divide launches).
        out = pl.pallas_call(
            _single_block_kernel,
            out_shape=jax.ShapeDtypeStruct((8, _LANE), jnp.float32),
            grid_spec=pltpu.PrefetchScalarGridSpec(
                num_scalar_prefetch=0,
                grid=(1,),
                in_specs=[
                    pl.BlockSpec((rows, _LANE), lambda i: (0, 0)),
                    pl.BlockSpec((rows, _LANE), lambda i: (0, 0)),
                ],
                out_specs=pl.BlockSpec((8, _LANE), lambda i: (0, 0)),
            ),
            compiler_params=pltpu.CompilerParams(
                dimension_semantics=("arbitrary",)),
            cost_estimate=cost,
        )(p2, l2)
        return out[0, 0]

    row_tile = max_rows               # multiple of 32 -> legal for f32/bf16/int8
    nblocks = pl.cdiv(rows, row_tile)
    rem = rows % row_tile             # static; nonzero only if last block partial

    # v7x has 2 TensorCores per chip: plain "parallel" does not shard the grid
    # across them, CORE_PARALLEL does.  Single-TC chips keep "parallel".
    if "v7" in kind:
        dim_sem = (pltpu.CORE_PARALLEL,)
    else:
        dim_sem = ("parallel",)

    partials = pl.pallas_call(
        _make_partial_kernel(row_tile, rem, nblocks),
        out_shape=jax.ShapeDtypeStruct((nblocks, 8, _LANE), jnp.float32),
        grid_spec=pltpu.PrefetchScalarGridSpec(
            num_scalar_prefetch=0,
            grid=(nblocks,),
            in_specs=[
                pl.BlockSpec((row_tile, _LANE), lambda i: (i, 0)),
                pl.BlockSpec((row_tile, _LANE), lambda i: (i, 0)),
            ],
            out_specs=pl.BlockSpec((1, 8, _LANE), lambda i: (i, 0, 0)),
        ),
        compiler_params=pltpu.CompilerParams(dimension_semantics=dim_sem),
        cost_estimate=cost,
    )(p2, l2)

    # Tiny final combine (hierarchical f32 sum over per-block partials) + divide.
    intersection = jnp.sum(partials[:, 0, 0])
    denom = jnp.sum(partials[:, 0, 1])
    return (2.0 * intersection + smooth) / (denom + smooth)


if __name__ == "__main__":
    key = jax.random.PRNGKey(0)
    k1, k2, k3, k4 = jax.random.split(key, 4)

    def ref_dice(p, l):
        s = 1.0
        pf = p.reshape(-1).astype(jnp.float32)
        lf = l.reshape(-1).astype(jnp.float32)
        return (2.0 * jnp.sum(pf * lf) + s) / (jnp.sum(pf) + jnp.sum(lf) + s)

    # 1) Primary small example: NCHW (2, 4, 16, 16) -> single-block fast path.
    preds = jax.nn.sigmoid(jax.random.normal(k1, (2, 4, 16, 16), dtype=jnp.float32))
    labels = (jax.random.uniform(k2, (2, 4, 16, 16)) > 0.5).astype(jnp.float32)
    dice = jax.block_until_ready(dice_coefficient(preds, labels))
    assert jnp.allclose(dice, ref_dice(preds, labels), rtol=1e-5, atol=1e-6), dice

    # 2) Exercise the multi-block grid + last-block row masking by forcing a
    #    tiny block (100 rows, row_tile=32 -> 4 blocks, remainder 4 rows).
    p2 = jax.nn.sigmoid(jax.random.normal(k3, (2, 4, 40, 40), dtype=jnp.float32))
    l2 = (jax.random.uniform(k4, (2, 4, 40, 40)) > 0.5).astype(jnp.float32)
    dice2 = jax.block_until_ready(dice_coefficient(p2, l2, block_bytes=16 * 1024))
    assert jnp.allclose(dice2, ref_dice(p2, l2), rtol=1e-5, atol=1e-6), dice2

    # 3) numel not a multiple of 128 (lane-pad path).
    p3 = jax.nn.sigmoid(jax.random.normal(k1, (3, 5, 7, 11), dtype=jnp.float32))
    l3 = (jax.random.uniform(k2, (3, 5, 7, 11)) > 0.5).astype(jnp.float32)
    dice3 = jax.block_until_ready(dice_coefficient(p3, l3))
    assert jnp.allclose(dice3, ref_dice(p3, l3), rtol=1e-5, atol=1e-6), dice3

    print("KERNEL_OK")
</pallas_src>

<mosaic_0001>
module attributes {stable_mosaic.version = 11 : i64} {
  func.func @_single_block_kernel(%arg0: i32, %arg1: memref<16x128xf32, #tpu.memory_space<vmem>>, %arg2: memref<16x128xf32, #tpu.memory_space<vmem>>, %arg3: memref<8x128xf32, #tpu.memory_space<vmem>>) attributes {dimension_semantics = [#tpu.dimension_semantics<arbitrary>], iteration_bounds = array<i64: 1>, scalar_prefetch = 0 : i64, scratch_operands = 0 : i64, tpu.core_type = #tpu.core_type<tc>, window_params = [{pipeline_mode = #tpu.pipeline_mode<synchronous>, transform_indices = @transform_0, window_bounds = array<i64: 16, 128>}, {pipeline_mode = #tpu.pipeline_mode<synchronous>, transform_indices = @transform_1, window_bounds = array<i64: 16, 128>}, {pipeline_mode = #tpu.pipeline_mode<synchronous>, transform_indices = @transform_2, window_bounds = array<i64: 8, 128>}]} {
    %c0 = arith.constant 0 : index
    %c0_0 = arith.constant 0 : index
    %0 = vector.load %arg1[%c0, %c0_0] : memref<16x128xf32, #tpu.memory_space<vmem>>, vector<16x128xf32>
    %c0_1 = arith.constant 0 : index
    %c0_2 = arith.constant 0 : index
    %1 = vector.load %arg2[%c0_1, %c0_2] : memref<16x128xf32, #tpu.memory_space<vmem>>, vector<16x128xf32>
    %2 = arith.mulf %0, %1 : vector<16x128xf32>
    %3 = vector.shape_cast %2 : vector<16x128xf32> to vector<1x16x128xf32>
    %cst = arith.constant dense<0.000000e+00> : vector<1xf32>
    %4 = vector.multi_reduction <add>, %3, %cst [1, 2] : vector<1x16x128xf32> to vector<1xf32>
    %5 = vector.shape_cast %4 : vector<1xf32> to vector<1x1x1xf32>
    %6 = vector.extract %5[0, 0, 0] : f32 from vector<1x1x1xf32>
    %7 = arith.addf %0, %1 : vector<16x128xf32>
    %8 = vector.shape_cast %7 : vector<16x128xf32> to vector<1x16x128xf32>
    %cst_3 = arith.constant dense<0.000000e+00> : vector<1xf32>
    %9 = vector.multi_reduction <add>, %8, %cst_3 [1, 2] : vector<1x16x128xf32> to vector<1xf32>
    %10 = vector.shape_cast %9 : vector<1xf32> to vector<1x1x1xf32>
    %11 = vector.extract %10[0, 0, 0] : f32 from vector<1x1x1xf32>
    %cst_4 = arith.constant 2.000000e+00 : f32
    %12 = arith.mulf %cst_4, %6 : f32
    %cst_5 = arith.constant 1.000000e+00 : f32
    %13 = arith.addf %12, %cst_5 : f32
    %cst_6 = arith.constant 1.000000e+00 : f32
    %14 = arith.addf %11, %cst_6 : f32
    %15 = arith.divf %13, %14 : f32
    %16 = tpu.iota {dimensions = array<i32: 0>} : vector<8x128xi32>
    %17 = tpu.iota {dimensions = array<i32: 1>} : vector<8x128xi32>
    %c0_i32 = arith.constant 0 : i32
    %18 = vector.broadcast %c0_i32 : i32 to vector<8x128xi32>
    %19 = arith.cmpi eq, %16, %18 : vector<8x128xi32>
    %c0_i32_7 = arith.constant 0 : i32
    %20 = vector.broadcast %c0_i32_7 : i32 to vector<8x128xi32>
    %21 = arith.cmpi eq, %17, %20 : vector<8x128xi32>
    %22 = arith.andi %19, %21 : vector<8x128xi1>
    %c0_i32_8 = arith.constant 0 : i32
    %23 = vector.broadcast %c0_i32_8 : i32 to vector<8x128xi32>
    %24 = arith.cmpi eq, %16, %23 : vector<8x128xi32>
    %c1_i32 = arith.constant 1 : i32
    %25 = vector.broadcast %c1_i32 : i32 to vector<8x128xi32>
    %26 = arith.cmpi eq, %17, %25 : vector<8x128xi32>
    %27 = arith.andi %24, %26 : vector<8x128xi1>
    %cst_9 = arith.constant 0.000000e+00 : f32
    %cst_10 = arith.constant 0.000000e+00 : f32
    %28 = vector.broadcast %cst_9 : f32 to vector<8x128xf32>
    %29 = vector.broadcast %cst_10 : f32 to vector<8x128xf32>
    %30 = arith.select %27, %28, %29 : vector<8x128xi1>, vector<8x128xf32>
    %31 = vector.broadcast %15 : f32 to vector<8x128xf32>
    %32 = arith.select %22, %31, %30 : vector<8x128xi1>, vector<8x128xf32>
    %c0_11 = arith.constant 0 : index
    %c0_12 = arith.constant 0 : index
    %33 = vector.load %arg3[%c0_11, %c0_12] : memref<8x128xf32, #tpu.memory_space<vmem>>, vector<8x128xf32>
    tpu.vector_store %arg3[%c0_11, %c0_12], %32 {strides = array<i32>} : memref<8x128xf32, #tpu.memory_space<vmem>>, vector<8x128xf32>,
    return
  }
  func.func @transform_0(%arg0: i32) -> (i32, i32) {
    %c0_i32 = arith.constant 0 : i32
    %c0_i32_0 = arith.constant 0 : i32
    %c0_i32_1 = arith.constant 0 : i32
    return %c0_i32, %c0_i32_0 : i32, i32
  }
  func.func @transform_1(%arg0: i32) -> (i32, i32) {
    %c0_i32 = arith.constant 0 : i32
    %c0_i32_0 = arith.constant 0 : i32
    %c0_i32_1 = arith.constant 0 : i32
    return %c0_i32, %c0_i32_0 : i32, i32
  }
  func.func @transform_2(%arg0: i32) -> (i32, i32) {
    %c0_i32 = arith.constant 0 : i32
    %c0_i32_0 = arith.constant 0 : i32
    %c0_i32_1 = arith.constant 0 : i32
    return %c0_i32, %c0_i32_0 : i32, i32
  }
}

</mosaic_0001>

<bundles_post_ra>
// kernel: tpu_custom_call.1
= control target key start
LH: loop header
LB: loop body
LE: loop exit
PB: predicated region body
PF: predicated region fallthrough
CT: control target
= control target key end

     0   :  { %7 = vsyncpa [#allocation3], 0  ;;  %s240_s0 = inlined_call_operand.hbm [shape: f32[16,128], index: 0, kind: input, shape index: {}]   ;;  %s241_s1 = inlined_call_operand.hbm [shape: f32[16,128], index: 1, kind: input, shape index: {}]   ;;  %s242_s2 = inlined_call_operand.hbm [shape: f32[8,128], index: 2, kind: output, shape index: {}]  }
   0x1   :  { %8 = vsyncpa [#allocation6], 0 }
   0x2   :  { %9 = vsyncpa [#allocation4], 0  ;;  %s14_s11 = sshll.u32 %s240_s0, 4  ;;  %s211_s12 = smov [#allocation2]   ;;  %s15_s11 = int_to_ptr.hbm [resolvable:$true] %s14_s11 }
   0x3   :  { %s16_s13 = sshll.u32 %s211_s12, 4  ;;  %s27_s16 = sshll.u32 %s241_s1, 4  ;;  %s17_s13 = int_to_ptr.vmem [resolvable:$true] %s16_s13  ;;  %s28_s16 = int_to_ptr.hbm [resolvable:$true] %s27_s16 }
   0x4   :  { %s212_s17 = smov 128   ;;  %s213_s18 = smov 8  }
   0x5   :  { %22 = dma.hbm_to_vmem [thread:$0]  %s15_s11, 256, %s17_s13, [#allocation3], %s212_s17, %s212_s17, %s213_s18  }
   0x6   :  { %s214_s19 = smov [#allocation5]  }
   0x7   :  { %s29_s20 = sshll.u32 %s214_s19, 4  ;;  %s30_s20 = int_to_ptr.vmem [resolvable:$true] %s29_s20 }
   0x8   :  { %35 = dma.hbm_to_vmem [thread:$0]  %s28_s16, 256, %s30_s20, [#allocation6], %s212_s17, %s212_s17, %s213_s18  }
   0x9   :  { %205 = dma.done.wait [#allocation3], 256  }
   0xa   :  { %206 = vsyncadd [#allocation3], 4294967040 }
   0xb   :  { %207 = dma.done.wait [#allocation6], 256  }
   0xc   :  { %208 = vsyncadd [#allocation6], 4294967040  ;;  %v44_v0 = vld [vmem:[#allocation2] sm:$0xff]  ;;  %v45_v1 = vld [vmem:[#allocation2 + $0x8] sm:$0xff]  ;;  %v92_v35 = vlaneseq  ;;  %s215_s24 = smov [#allocation7]   ;;  %s109_s29 = sshll.u32 %s242_s2, 4  ;;  %s110_s29 = int_to_ptr.hbm [resolvable:$true] %s109_s29 }
   0xd   :  { %v46_v2 = vld [vmem:[#allocation5] sm:$0xff]  ;;  %v47_v3 = vld [vmem:[#allocation5 + $0x8] sm:$0xff]  ;;  %s107_s25 = sshll.u32 %s215_s24, 4  ;;  %s108_s25 = int_to_ptr.vmem [resolvable:$true] %s107_s25 }
   0xe   :  { %v48_v4 = vmul.f32 %v46_v2, %v44_v0  ;;  %v49_v5 = vmul.f32 %v47_v3, %v45_v1  ;;  %v60_v7 = vadd.f32 %v46_v2, %v44_v0  ;;  %v61_v8 = vadd.f32 %v47_v3, %v45_v1 }
   0xf   :  { %v93_v36 = vshrl.u32 %v92_v35, 7  ;;  %v95_v37 = vand.u32 127, %v92_v35 }
  0x10   :  { %v50_v6 = vadd.f32 %v49_v5, %v48_v4  ;;  %v62_v9 = vadd.f32 %v61_v8, %v60_v7 }
  0x11   :  { %vm96_vm4 = vcmp.eq.s32.totalorder %v93_v36, 0  ;;  %vm97_vm5 = vcmp.eq.s32.totalorder %v95_v37, 0 }
  0x12   :  { %51 = vadd.xlane.f32.xlu0 %v50_v6  ;;  %vm98_vm6 = vmand %vm96_vm4, %vm97_vm5 }
  0x1a   :  { %63 = vadd.xlane.f32.xlu0 %v62_v9 }
  0x85   :  { %v52_v10 = vpop.xlane.xlu0 %51 }
  0x86   :  { %v53_v11 = vrot.slane %v52_v10, 4 }
  0x88   :  { %v54_v12 = vadd.f32 %v53_v11, %v52_v10 }
  0x8a   :  { %v55_v13 = vrot.slane %v54_v12, 2 }
  0x8c   :  { %v56_v14 = vadd.f32 %v55_v13, %v54_v12 }
  0x8d   :  { %v64_v15 = vpop.xlane.xlu0 %63 }
  0x8e   :  { %v65_v16 = vrot.slane %v64_v15, 4  ;;  %v57_v17 = vrot.slane %v56_v14, 1 }
  0x90   :  { %v66_v18 = vadd.f32 %v65_v16, %v64_v15  ;;  %v58_v19 = vadd.f32 %v57_v17, %v56_v14 }
  0x92   :  { %v67_v20 = vrot.slane %v66_v18, 2  ;;  %120 = vpush %v58_v19 }
  0x94   :  { %v68_v21 = vadd.f32 %v67_v20, %v66_v18 }
  0x96   :  { %v69_v22 = vrot.slane %v68_v21, 1 }
  0x98   :  { %v70_v23 = vadd.f32 %v69_v22, %v68_v21 }
  0x9a   :  { %122 = vpush %v70_v23 }
  0xc3   :  { %s121_s0 = spop %120 }
  0xc4   :  { %s72_s22 = smul.f32 2.0, %s121_s0 }
  0xc6   :  { %s73_s23 = sadd.f32 1.0, %s72_s22 }
  0xcb   :  { %s123_s1 = spop %122 }
  0xcc   :  { %s74_s21 = sadd.f32 1.0, %s123_s1 }
  0xce   :  { %v75_v24 = vstv %s74_s21 }
  0xcf   :  { %131 = vrcp.f32 %v75_v24  ;;  %v87_v28 = vand.u32 2147483648, %v75_v24  ;;  %v85_v30 = vand.u32 2147483647, %v75_v24  ;;  %vm81_vm1 = vweird.f32 %v75_v24 }
  0xd1   :  { %v88_v32 = vor.u32 1.1754944e-38, %v87_v28  ;;  %vm86_vm3 = vcmp.eq.f32.partialorder %v85_v30, 8.507059e+37 }
  0xd5   :  { %v132_v25 = vpop.eup %131 }
  0xd6   :  { %v77_v26 = vmul.f32 %v132_v25, %v75_v24  ;;  %vm82_vm0 = vweird.f32 %v132_v25 }
  0xd7   :  { %vm83_vm2 = vmor %vm81_vm1, %vm82_vm0 }
  0xd8   :  { %v78_v27 = vsub.f32 1.0, %v77_v26 }
  0xda   :  { %v79_v29 = vmul.f32 %v132_v25, %v78_v27 }
  0xdc   :  { %v80_v31 = vadd.f32 %v132_v25, %v79_v29 }
  0xde   :  { %v84_v33 = vsel %vm83_vm2, %v132_v25, %v80_v31 }
  0xdf   :  { %v89_v34 = vsel %vm86_vm3, %v88_v32, %v84_v33 }
  0xe0   :  { %124 = vpush %v89_v34 }
 0x111   :  { %s125_s26 = spop %124 }
 0x112   :  { %s91_s30 = smul.f32 %s125_s26, %s73_s23 }
 0x114   :  { %v99_v38 = vstv %s91_s30 }
 0x115   :  { %v100_v39 = vsel %vm98_vm6, %v99_v38, 0.0 }
 0x116   :  { %101 = vst [vmem:[#allocation7] sm:$0xff] %v100_v39 }
 0x117   :  { %112 = dma.vmem_to_hbm [thread:$0]  %s108_s25, 128, %s110_s29, [#allocation4]  }
 0x118   :  { %209 = dma.done.wait [#allocation4], 128  }
 0x119   :  { %210 = vsyncadd [#allocation4], 4294967168 }
 0x11a   :  { %117 = vsyncpa [#allocation3], 1 }
 0x11b   :  { %118 = vsyncpa [#allocation6], 1 }
 0x11c   :  { %119 = vsyncpa [#allocation4], 1 }

</bundles_post_ra>
